<compile_context>
chip_gen: v5e
topology: v5e:2x2
jax: 0.10.0
libtpu: 0.0.40
codegen_flags: <defaults>
</compile_context>

<pallas_src>
import functools

import jax
import jax.numpy as jnp
from jax.experimental import pallas as pl
from jax.experimental.pallas import tpu as pltpu


def _round_up(x, m):
    return ((x + m - 1) // m) * m


def _sanitize_tile(t):
    """Round down to a power-of-two multiple of 128 (>= 128)."""
    t = max(128, int(t))
    p = 128
    while p * 2 <= t:
        p *= 2
    return p


def _pick_tile(t, seq):
    """Clamp a requested tile so tiny sequences don't get absurd padding."""
    t = _sanitize_tile(t)
    while t > 128 and t >= 2 * _round_up(seq, 128):
        t //= 2
    return t


# ---------------------------------------------------------------------------
# Kernel 1: fused QKV projection, tiled over sequence rows.
#   qkv = x_tile @ [Wq*scale | Wk | Wv]   (bf16 operands, f32 accumulate)
# Outputs Q, K, V as separate bf16 arrays (halves HBM traffic into the
# flash kernel and feeds the MXU its preferred operand dtype).
# ---------------------------------------------------------------------------
def _qkv_projection_kernel(x_ref, w_ref, q_ref, k_ref, v_ref, *, d_out_p):
    qkv = jnp.dot(x_ref[...], w_ref[...], preferred_element_type=jnp.float32)
    # Lane-aligned static slices (d_out_p is a multiple of 128).
    q_ref[...] = qkv[:, :d_out_p].astype(q_ref.dtype)
    k_ref[...] = qkv[:, d_out_p:2 * d_out_p].astype(k_ref.dtype)
    v_ref[...] = qkv[:, 2 * d_out_p:].astype(v_ref.dtype)


# ---------------------------------------------------------------------------
# Kernel 2: flash-attention over precomputed Q, K, V (online softmax).
# ---------------------------------------------------------------------------
def _flash_attention_kernel(q_ref, k_ref, v_ref, bias_ref, o_ref,
                            m_ref, l_ref, acc_ref):
    kv_idx = pl.program_id(1)

    @pl.when(kv_idx == 0)
    def _init():
        m_ref[...] = jnp.full(m_ref.shape, -jnp.inf, m_ref.dtype)
        l_ref[...] = jnp.zeros(l_ref.shape, l_ref.dtype)
        acc_ref[...] = jnp.zeros(acc_ref.shape, acc_ref.dtype)

    # scores = q @ k.T without materializing a transpose: contract last dims.
    # bf16 operands, f32 accumulation.  1/sqrt(d_out) already folded into q.
    s = jax.lax.dot_general(
        q_ref[...], k_ref[...],
        dimension_numbers=(((1,), (1,)), ((), ())),
        preferred_element_type=jnp.float32,
    )
    # Additive key-padding bias: 0 for real keys, -inf for padded ones.
    # (The first KV tile always contains real keys, so m stays finite.)
    s = s + bias_ref[...]

    # Online (streaming) softmax update, all state in f32.
    m_prev = m_ref[...]
    m_new = jnp.maximum(m_prev, jnp.max(s, axis=-1, keepdims=True))
    alpha = jnp.exp(m_prev - m_new)
    p = jnp.exp(s - m_new)
    l_ref[...] = alpha * l_ref[...] + jnp.sum(p, axis=-1, keepdims=True)
    acc_ref[...] = alpha * acc_ref[...] + jnp.dot(
        p.astype(v_ref.dtype), v_ref[...], preferred_element_type=jnp.float32)
    m_ref[...] = m_new

    @pl.when(kv_idx == pl.num_programs(1) - 1)
    def _finalize():
        # Exact divide: finalize runs once per query tile, approx reciprocal
        # would only trade accuracy for nothing.
        o_ref[...] = (acc_ref[...] / l_ref[...]).astype(o_ref.dtype)


def self_attention_v2(x, w_query, w_key, w_value, *, tq=256, tkv=512):
    """SelfAttention_v2 forward.

    x: [seq, d_in]; w_*: [d_in, d_out] (already transposed from torch layout).
    Returns context vectors [seq, d_out] in float32.
    """
    seq, d_in = x.shape
    d_out = w_query.shape[1]
    scale = 1.0 / float(d_out) ** 0.5          # uses the *real* d_out

    # Pad feature dims to MXU / lane friendly sizes.  Zero padding of
    # d_in / d_out is exact (zero rows/cols contribute nothing).
    d_in_p = _round_up(d_in, 128)
    d_out_p = _round_up(d_out, 128)

    # Tile selection (power-of-two multiples of 128 so everything divides).
    tq = _pick_tile(tq, seq)
    tkv = _pick_tile(tkv, seq)
    seq_p = _round_up(seq, max(tq, tkv))
    # Keep >= 2 query tiles when the sequence allows (v7x has 2 TensorCores).
    while tq > 128 and seq_p // tq < 2:
        tq //= 2

    f32, bf16 = jnp.float32, jnp.bfloat16

    # bf16 operands for every MXU matmul (f32 accumulation inside kernels).
    x_p = jnp.zeros((seq_p, d_in_p), bf16).at[:seq, :d_in].set(x.astype(bf16))
    w_qkv = (
        jnp.zeros((d_in_p, 3 * d_out_p), f32)
        .at[:d_in, :d_out].set(w_query.astype(f32) * scale)      # scale folded in
        .at[:d_in, d_out_p:d_out_p + d_out].set(w_key.astype(f32))
        .at[:d_in, 2 * d_out_p:2 * d_out_p + d_out].set(w_value.astype(f32))
        .astype(bf16)
    )

    # Additive key-padding bias row: 0 for real keys, -inf for padded keys.
    bias = jnp.where(jnp.arange(seq_p) < seq, 0.0, -jnp.inf).astype(f32)[None, :]

    # ---- Pass 1: fused QKV projection (once, not per query tile). ----------
    trow = tq  # divides seq_p (both are power-of-two multiples of 128)
    proj_kernel = functools.partial(_qkv_projection_kernel, d_out_p=d_out_p)
    qkv_struct = jax.ShapeDtypeStruct((seq_p, d_out_p), bf16)
    row_spec = pl.BlockSpec((trow, d_out_p), lambda i: (i, 0))
    # TODO(synk): for large d_in/d_out (v7x 64 MiB VMEM) block the d_in axis
    # and single-buffer the constant weight block instead of keeping the full
    # [d_in_p, 3*d_out_p] weight resident.
    q_a, k_a, v_a = pl.pallas_call(
        proj_kernel,
        out_shape=(qkv_struct, qkv_struct, qkv_struct),
        grid_spec=pltpu.PrefetchScalarGridSpec(
            num_scalar_prefetch=0,
            grid=(seq_p // trow,),
            in_specs=[
                pl.BlockSpec((trow, d_in_p), lambda i: (i, 0)),          # x rows
                pl.BlockSpec((d_in_p, 3 * d_out_p), lambda i: (0, 0)),   # [Wq|Wk|Wv]
            ],
            out_specs=[row_spec, row_spec, row_spec],
        ),
        compiler_params=pltpu.CompilerParams(
            dimension_semantics=("parallel",)),
    )(x_p, w_qkv)

    # ---- Pass 2: flash attention over precomputed Q, K, V. -----------------
    grid = (seq_p // tq, seq_p // tkv)
    out_p = pl.pallas_call(
        _flash_attention_kernel,
        out_shape=jax.ShapeDtypeStruct((seq_p, d_out_p), f32),
        grid_spec=pltpu.PrefetchScalarGridSpec(
            num_scalar_prefetch=0,
            grid=grid,
            in_specs=[
                pl.BlockSpec((tq, d_out_p), lambda qi, ki: (qi, 0)),   # Q tile
                pl.BlockSpec((tkv, d_out_p), lambda qi, ki: (ki, 0)),  # K block
                pl.BlockSpec((tkv, d_out_p), lambda qi, ki: (ki, 0)),  # V block
                pl.BlockSpec((1, tkv), lambda qi, ki: (0, ki)),        # key bias
            ],
            out_specs=pl.BlockSpec((tq, d_out_p), lambda qi, ki: (qi, 0)),
            scratch_shapes=[
                pltpu.VMEM((tq, 1), f32),        # running max m
                pltpu.VMEM((tq, 1), f32),        # running denom l
                pltpu.VMEM((tq, d_out_p), f32),  # f32 output accumulator
            ],
        ),
        compiler_params=pltpu.CompilerParams(
            dimension_semantics=("parallel", "arbitrary")),
    )(q_a, k_a, v_a, bias)

    return out_p[:seq, :d_out]


def self_attention_v2_ref(x, w_query, w_key, w_value):
    hi = jax.lax.Precision.HIGHEST
    q = jnp.dot(x, w_query, precision=hi)
    k = jnp.dot(x, w_key, precision=hi)
    v = jnp.dot(x, w_value, precision=hi)
    scores = jnp.dot(q, k.T, precision=hi)
    w = jax.nn.softmax(scores / (k.shape[-1] ** 0.5), axis=-1)
    return jnp.dot(w, v, precision=hi)


if __name__ == "__main__":
    # ---- Test 1: exact toy setup from the reference script (seq=6, d_in=3, d_out=2).
    x = jnp.array(
        [[0.43, 0.15, 0.89],
         [0.55, 0.87, 0.66],
         [0.57, 0.85, 0.64],
         [0.22, 0.58, 0.33],
         [0.77, 0.25, 0.10],
         [0.05, 0.80, 0.55]], dtype=jnp.float32)
    d_in, d_out = 3, 2

    key = jax.random.PRNGKey(0)
    kq, kk, kv, k2 = jax.random.split(key, 4)
    bound = 1.0 / (d_in ** 0.5)   # PyTorch nn.Linear default init range
    w_query = jax.random.uniform(kq, (d_in, d_out), jnp.float32, -bound, bound)
    w_key = jax.random.uniform(kk, (d_in, d_out), jnp.float32, -bound, bound)
    w_value = jax.random.uniform(kv, (d_in, d_out), jnp.float32, -bound, bound)

    out = jax.block_until_ready(self_attention_v2(x, w_query, w_key, w_value))
    ref = self_attention_v2_ref(x, w_query, w_key, w_value)
    assert out.shape == (6, 2)
    # Tolerance accounts for bf16 MXU operands (softmax state stays f32).
    assert jnp.allclose(out, ref, atol=2e-2, rtol=2e-2), "toy case mismatch vs ref"

    # ---- Test 2: multi-tile case exercising the online softmax across query
    # tiles and the padded-key bias (seq=300, d_in=48, d_out=64).
    seq2, d_in2, d_out2 = 300, 48, 64
    ka, kb, kc, kd = jax.random.split(k2, 4)
    x2 = jax.random.normal(ka, (seq2, d_in2), jnp.float32)
    wq2 = jax.random.normal(kb, (d_in2, d_out2), jnp.float32) * 0.1
    wk2 = jax.random.normal(kc, (d_in2, d_out2), jnp.float32) * 0.1
    wv2 = jax.random.normal(kd, (d_in2, d_out2), jnp.float32) * 0.1

    out2 = jax.block_until_ready(self_attention_v2(x2, wq2, wk2, wv2))
    ref2 = self_attention_v2_ref(x2, wq2, wk2, wv2)
    assert out2.shape == (seq2, d_out2)
    assert jnp.allclose(out2, ref2, atol=2e-2, rtol=2e-2), "tiled case mismatch vs ref"

    print("KERNEL_OK")
</pallas_src>

<mosaic_0001>
module attributes {stable_mosaic.version = 11 : i64} {
  func.func @_qkv_projection_kernel(%arg0: i32, %arg1: memref<128x128xbf16, #tpu.memory_space<vmem>>, %arg2: memref<128x384xbf16, #tpu.memory_space<vmem>>, %arg3: memref<128x128xbf16, #tpu.memory_space<vmem>>, %arg4: memref<128x128xbf16, #tpu.memory_space<vmem>>, %arg5: memref<128x128xbf16, #tpu.memory_space<vmem>>) attributes {dimension_semantics = [#tpu.dimension_semantics<parallel>], iteration_bounds = array<i64: 1>, scalar_prefetch = 0 : i64, scratch_operands = 0 : i64, tpu.core_type = #tpu.core_type<tc>, window_params = [{transform_indices = @transform_0, window_bounds = array<i64: 128, 128>}, {pipeline_mode = #tpu.pipeline_mode<synchronous>, transform_indices = @transform_1, window_bounds = array<i64: 128, 384>}, {transform_indices = @transform_2, window_bounds = array<i64: 128, 128>}, {transform_indices = @transform_3, window_bounds = array<i64: 128, 128>}, {transform_indices = @transform_4, window_bounds = array<i64: 128, 128>}]} {
    %c0 = arith.constant 0 : index
    %c0_0 = arith.constant 0 : index
    %0 = vector.load %arg1[%c0, %c0_0] : memref<128x128xbf16, #tpu.memory_space<vmem>>, vector<128x128xbf16>
    %c0_1 = arith.constant 0 : index
    %c0_2 = arith.constant 0 : index
    %1 = vector.load %arg2[%c0_1, %c0_2] : memref<128x384xbf16, #tpu.memory_space<vmem>>, vector<128x384xbf16>
    %cst = arith.constant dense<0.000000e+00> : vector<128x384xf32>
    %2 = tpu.matmul %0, %1, %cst {dimension_numbers = #tpu.dot_dimension_numbers<[1], [0], [0], [1], [0, 0, 1, 1], [], []>} : vector<128x128xbf16>, vector<128x384xbf16>, vector<128x384xf32> -> vector<128x384xf32>
    %3 = vector.extract_strided_slice %2 {offsets = [0, 0], sizes = [128, 128], strides = [1, 1]} : vector<128x384xf32> to vector<128x128xf32>
    %4 = arith.truncf %3 : vector<128x128xf32> to vector<128x128xbf16>
    %c0_3 = arith.constant 0 : index
    %c0_4 = arith.constant 0 : index
    %5 = vector.load %arg3[%c0_3, %c0_4] : memref<128x128xbf16, #tpu.memory_space<vmem>>, vector<128x128xbf16>
    tpu.vector_store %arg3[%c0_3, %c0_4], %4 {strides = array<i32>} : memref<128x128xbf16, #tpu.memory_space<vmem>>, vector<128x128xbf16>,
    %6 = vector.extract_strided_slice %2 {offsets = [0, 128], sizes = [128, 128], strides = [1, 1]} : vector<128x384xf32> to vector<128x128xf32>
    %7 = arith.truncf %6 : vector<128x128xf32> to vector<128x128xbf16>
    %c0_5 = arith.constant 0 : index
    %c0_6 = arith.constant 0 : index
    %8 = vector.load %arg4[%c0_5, %c0_6] : memref<128x128xbf16, #tpu.memory_space<vmem>>, vector<128x128xbf16>
    tpu.vector_store %arg4[%c0_5, %c0_6], %7 {strides = array<i32>} : memref<128x128xbf16, #tpu.memory_space<vmem>>, vector<128x128xbf16>,
    %9 = vector.extract_strided_slice %2 {offsets = [0, 256], sizes = [128, 128], strides = [1, 1]} : vector<128x384xf32> to vector<128x128xf32>
    %10 = arith.truncf %9 : vector<128x128xf32> to vector<128x128xbf16>
    %c0_7 = arith.constant 0 : index
    %c0_8 = arith.constant 0 : index
    %11 = vector.load %arg5[%c0_7, %c0_8] : memref<128x128xbf16, #tpu.memory_space<vmem>>, vector<128x128xbf16>
    tpu.vector_store %arg5[%c0_7, %c0_8], %10 {strides = array<i32>} : memref<128x128xbf16, #tpu.memory_space<vmem>>, vector<128x128xbf16>,
    return
  }
  func.func @transform_0(%arg0: i32) -> (i32, i32) {
    %c0_i32 = arith.constant 0 : i32
    %c0_i32_0 = arith.constant 0 : i32
    return %arg0, %c0_i32 : i32, i32
  }
  func.func @transform_1(%arg0: i32) -> (i32, i32) {
    %c0_i32 = arith.constant 0 : i32
    %c0_i32_0 = arith.constant 0 : i32
    %c0_i32_1 = arith.constant 0 : i32
    return %c0_i32, %c0_i32_0 : i32, i32
  }
  func.func @transform_2(%arg0: i32) -> (i32, i32) {
    %c0_i32 = arith.constant 0 : i32
    %c0_i32_0 = arith.constant 0 : i32
    return %arg0, %c0_i32 : i32, i32
  }
  func.func @transform_3(%arg0: i32) -> (i32, i32) {
    %c0_i32 = arith.constant 0 : i32
    %c0_i32_0 = arith.constant 0 : i32
    return %arg0, %c0_i32 : i32, i32
  }
  func.func @transform_4(%arg0: i32) -> (i32, i32) {
    %c0_i32 = arith.constant 0 : i32
    %c0_i32_0 = arith.constant 0 : i32
    return %arg0, %c0_i32 : i32, i32
  }
}

</mosaic_0001>

<bundles_post_ra>
// kernel: tpu_custom_call.1
= control target key start
LH: loop header
LB: loop body
LE: loop exit
PB: predicated region body
PF: predicated region fallthrough
CT: control target
= control target key end

     0   :  { %10 = vsyncpa [#allocation3], 0  ;;  %s1133_s0 = inlined_call_operand.hbm [shape: bf16[128,128], index: 0, kind: input, shape index: {}]   ;;  %s1134_s1 = inlined_call_operand.hbm [shape: bf16[128,384], index: 1, kind: input, shape index: {}]   ;;  %s1135_s2 = inlined_call_operand.hbm [shape: bf16[128,128], index: 2, kind: output, shape index: {0}]   ;;  %s1136_s3 = inlined_call_operand.hbm [shape: bf16[128,128], index: 3, kind: output, shape index: {1}]   ;;  %s1137_s4 = inlined_call_operand.hbm [shape: bf16[128,128], index: 4, kind: output, shape index: {2}]  }
   0x1   :  { %11 = vsyncpa [#allocation6], 0 }
   0x2   :  { %12 = vsyncpa [#allocation4], 0 }
   0x3   :  { %13 = vsyncpa [#allocation9], 0  ;;  %s18_s17 = sshll.u32 %s1133_s0, 4  ;;  %s1032_s18 = smov [#allocation2]   ;;  %s19_s17 = int_to_ptr.hbm [resolvable:$true] %s18_s17 }
   0x4   :  { %s20_s19 = sshll.u32 %s1032_s18, 4  ;;  %s31_s22 = sshll.u32 %s1134_s1, 4  ;;  %s21_s19 = int_to_ptr.vmem [resolvable:$true] %s20_s19  ;;  %s32_s22 = int_to_ptr.hbm [resolvable:$true] %s31_s22 }
   0x5   :  { %s1033_s23 = smov 64   ;;  %s1034_s24 = smov 4  }
   0x6   :  { %26 = dma.hbm_to_vmem [thread:$0]  %s19_s17, 1024, %s21_s19, [#allocation3], %s1033_s23, %s1033_s23, %s1034_s24  }
   0x7   :  { %s1035_s25 = smov [#allocation5]   ;;  %s1036_s27 = smov 192  }
   0x8   :  { %s33_s26 = sshll.u32 %s1035_s25, 4  ;;  %s1037_s0 = smov 12   ;;  %s34_s26 = int_to_ptr.vmem [resolvable:$true] %s33_s26 }
   0x9   :  { %39 = dma.hbm_to_vmem [thread:$0]  %s32_s22, 3072, %s34_s26, [#allocation6], %s1036_s27, %s1036_s27, %s1037_s0  }
   0xa   :  { %1024 = dma.done.wait [#allocation3], 1024  }
   0xb   :  { %1025 = vsyncadd [#allocation3], 4294966272 }
   0xc   :  { %1026 = dma.done.wait [#allocation6], 3072  }
   0xd   :  { %1027 = vsyncadd [#allocation6], 4294964224  ;;  %v688_v0 = vld [vmem:[#allocation5 + $0xa8] sm:$0xf]  ;;  %v728_v1 = vld [vmem:[#allocation5 + $0xb0] sm:$0xf0] }
   0xe   :  { %v727_v2 = vld [vmem:[#allocation5 + $0xac] sm:$0xf]  ;;  %v689_v3 = vor.u32 %v728_v1, %v688_v0  ;;  %v690_v4 = vld [vmem:[#allocation5 + $0xb4] sm:$0xf0]  ;;  %v696_v5 = vld [vmem:[#allocation5 + $0xb0] sm:$0xf] }
   0xf   :  { %v729_v6 = vld [vmem:[#allocation5 + $0xb8] sm:$0xf0]  ;;  %v1075_v7 = vor.u32 %v727_v2, %v690_v4  ;;  %v676_v9 = vld [vmem:[#allocation5 + $0x90] sm:$0xf]  ;;  %v724_v11 = vld [vmem:[#allocation5 + $0x94] sm:$0xf] }
  0x10   :  { %v1077_v8 = vor.u32 %v729_v6, %v696_v5  ;;  %v725_v10 = vld [vmem:[#allocation5 + $0x98] sm:$0xf0]  ;;  %272 = vmatpush.bf16.msra.mxu0 %v689_v3  ;;  %871 = vmatpush.bf16.msra.mxu3 %v689_v3  ;;  %v678_v13 = vld [vmem:[#allocation5 + $0x9c] sm:$0xf0]  ;;  %v684_v14 = vld [vmem:[#allocation5 + $0x98] sm:$0xf] }
  0x11   :  { %v677_v12 = vor.u32 %v725_v10, %v676_v9  ;;  %v726_v15 = vld [vmem:[#allocation5 + $0xa0] sm:$0xf0]  ;;  %321 = vmatpush.bf16.msra.mxu1 %v1075_v7  ;;  %v1081_v16 = vor.u32 %v724_v11, %v678_v13  ;;  %v664_v18 = vld [vmem:[#allocation5 + $0x78] sm:$0xf]  ;;  %v721_v20 = vld [vmem:[#allocation5 + $0x7c] sm:$0xf] }
  0x12   :  { %370 = vmatpush.bf16.msra.mxu2 %v1077_v8  ;;  %v1083_v17 = vor.u32 %v726_v15, %v684_v14  ;;  %v722_v19 = vld [vmem:[#allocation5 + $0x80] sm:$0xf0]  ;;  %v666_v21 = vld [vmem:[#allocation5 + $0x84] sm:$0xf0]  ;;  %v672_v22 = vld [vmem:[#allocation5 + $0x80] sm:$0xf] }
  0x13   :  { %v723_v23 = vld [vmem:[#allocation5 + $0x88] sm:$0xf0]  ;;  %v665_v24 = vor.u32 %v722_v19, %v664_v18  ;;  %v1087_v25 = vor.u32 %v721_v20, %v666_v21  ;;  %v652_v27 = vld [vmem:[#allocation5 + $0x60] sm:$0xf]  ;;  %v718_v29 = vld [vmem:[#allocation5 + $0x64] sm:$0xf] }
  0x14   :  { %273 = vmatpush.bf16.msra.mxu0 %v677_v12  ;;  %872 = vmatpush.bf16.msra.mxu3 %v677_v12  ;;  %v1089_v26 = vor.u32 %v723_v23, %v672_v22  ;;  %v719_v28 = vld [vmem:[#allocation5 + $0x68] sm:$0xf0]  ;;  %v654_v30 = vld [vmem:[#allocation5 + $0x6c] sm:$0xf0]  ;;  %v660_v31 = vld [vmem:[#allocation5 + $0x68] sm:$0xf] }
  0x15   :  { %322 = vmatpush.bf16.msra.mxu1 %v1081_v16  ;;  %v720_v32 = vld [vmem:[#allocation5 + $0x70] sm:$0xf0]  ;;  %v653_v33 = vor.u32 %v719_v28, %v652_v27  ;;  %v1093_v34 = vor.u32 %v718_v29, %v654_v30  ;;  %v640_v36 = vld [vmem:[#allocation5 + $0x48] sm:$0xf]  ;;  %v715_v38 = vld [vmem:[#allocation5 + $0x4c] sm:$0xf] }
  0x16   :  { %371 = vmatpush.bf16.msra.mxu2 %v1083_v17  ;;  %v1095_v35 = vor.u32 %v720_v32, %v660_v31  ;;  %v716_v37 = vld [vmem:[#allocation5 + $0x50] sm:$0xf0]  ;;  %v642_v39 = vld [vmem:[#allocation5 + $0x54] sm:$0xf0]  ;;  %v648_v40 = vld [vmem:[#allocation5 + $0x50] sm:$0xf] }
  0x17   :  { %v717_v41 = vld [vmem:[#allocation5 + $0x58] sm:$0xf0]  ;;  %v641_v42 = vor.u32 %v716_v37, %v640_v36  ;;  %v645_v43 = vor.u32 %v715_v38, %v642_v39  ;;  %v628_v45 = vld [vmem:[#allocation5 + $0x30] sm:$0xf]  ;;  %v712_v47 = vld [vmem:[#allocation5 + $0x34] sm:$0xf] }
  0x18   :  { %274 = vmatpush.bf16.msra.mxu0 %v665_v24  ;;  %873 = vmatpush.bf16.msra.mxu3 %v665_v24  ;;  %v1099_v44 = vor.u32 %v717_v41, %v648_v40  ;;  %v713_v46 = vld [vmem:[#allocation5 + $0x38] sm:$0xf0]  ;;  %v630_v48 = vld [vmem:[#allocation5 + $0x3c] sm:$0xf0]  ;;  %v636_v49 = vld [vmem:[#allocation5 + $0x38] sm:$0xf] }
  0x19   :  { %323 = vmatpush.bf16.msra.mxu1 %v1087_v25  ;;  %v714_v50 = vld [vmem:[#allocation5 + $0x40] sm:$0xf0]  ;;  %v629_v51 = vor.u32 %v713_v46, %v628_v45  ;;  %v633_v52 = vor.u32 %v712_v47, %v630_v48  ;;  %v616_v54 = vld [vmem:[#allocation5 + $0x18] sm:$0xf]  ;;  %v709_v56 = vld [vmem:[#allocation5 + $0x1c] sm:$0xf] }
  0x1a   :  { %372 = vmatpush.bf16.msra.mxu2 %v1089_v26  ;;  %v1102_v53 = vor.u32 %v714_v50, %v636_v49  ;;  %v710_v55 = vld [vmem:[#allocation5 + $0x20] sm:$0xf0]  ;;  %v618_v57 = vld [vmem:[#allocation5 + $0x24] sm:$0xf0]  ;;  %v624_v58 = vld [vmem:[#allocation5 + $0x20] sm:$0xf] }
  0x1b   :  { %v711_v59 = vld [vmem:[#allocation5 + $0x28] sm:$0xf0]  ;;  %v617_v60 = vor.u32 %v710_v55, %v616_v54  ;;  %v621_v61 = vor.u32 %v709_v56, %v618_v57  ;;  %v604_v63 = vld [vmem:[#allocation5] sm:$0xf]  ;;  %v706_v1 = vld [vmem:[#allocation5 + $0x4] sm:$0xf] }
  0x1c   :  { %275 = vmatpush.bf16.msra.mxu0 %v653_v33  ;;  %874 = vmatpush.bf16.msra.mxu3 %v653_v33  ;;  %v625_v62 = vor.u32 %v711_v59, %v624_v58  ;;  %v707_v0 = vld [vmem:[#allocation5 + $0x8] sm:$0xf0]  ;;  %v606_v2 = vld [vmem:[#allocation5 + $0xc] sm:$0xf0]  ;;  %v612_v3 = vld [vmem:[#allocation5 + $0x8] sm:$0xf] }
  0x1d   :  { %324 = vmatpush.bf16.msra.mxu1 %v1093_v34  ;;  %v708_v4 = vld [vmem:[#allocation5 + $0x10] sm:$0xf0]  ;;  %v605_v5 = vor.u32 %v707_v0, %v604_v63  ;;  %v609_v6 = vor.u32 %v706_v1, %v606_v2  ;;  %v698_v10 = vld [vmem:[#allocation2] sm:$0xff]  ;;  %v699_v12 = vld [vmem:[#allocation2 + $0x8] sm:$0xff]  ;;  %s1038_s1 = smov [#allocation7]   ;;  %s521_s5 = sshll.u32 %s1135_s2, 4  ;;  %s522_s5 = int_to_ptr.hbm [resolvable:$true] %s521_s5 }
  0x1e   :  { %373 = vmatpush.bf16.msra.mxu2 %v1095_v35  ;;  %v613_v9 = vor.u32 %v708_v4, %v612_v3  ;;  %v704_v11 = vld [vmem:[#allocation2 + $0x30] sm:$0xff]  ;;  %v705_v13 = vld [vmem:[#allocation2 + $0x38] sm:$0xff]  ;;  %v703_v15 = vld [vmem:[#allocation2 + $0x28] sm:$0xff]  ;;  %s519_s28 = sshll.u32 %s1038_s1, 4  ;;  %s1039_s6 = smov [#allocation8]   ;;  %s520_s28 = int_to_ptr.vmem [resolvable:$true] %s519_s28 }
  0x1f   :  { %v701_v14 = vld [vmem:[#allocation2 + $0x18] sm:$0xff]  ;;  %s532_s7 = sshll.u32 %s1039_s6, 4  ;;  %s534_s10 = sshll.u32 %s1136_s3, 4  ;;  %s533_s7 = int_to_ptr.vmem [resolvable:$true] %s532_s7  ;;  %s535_s10 = int_to_ptr.hbm [resolvable:$true] %s534_s10 }
  0x20   :  { %276 = vmatpush.bf16.msra.mxu0 %v641_v42  ;;  %875 = vmatpush.bf16.msra.mxu3 %v641_v42  ;;  %s1040_s11 = smov [#allocation10]   ;;  %s547_s14 = sshll.u32 %s1137_s4, 4  ;;  %s548_s14 = int_to_ptr.hbm [resolvable:$true] %s547_s14 }
  0x21   :  { %325 = vmatpush.bf16.msra.mxu1 %v645_v43  ;;  %s545_s12 = sshll.u32 %s1040_s11, 4  ;;  %s546_s12 = int_to_ptr.vmem [resolvable:$true] %s545_s12 }
  0x22   :  { %374 = vmatpush.bf16.msra.mxu2 %v1099_v44 }
  0x24   :  { %277 = vmatpush.bf16.msra.mxu0 %v629_v51  ;;  %876 = vmatpush.bf16.msra.mxu3 %v629_v51 }
  0x25   :  { %326 = vmatpush.bf16.msra.mxu1 %v633_v52 }
  0x26   :  { %375 = vmatpush.bf16.msra.mxu2 %v1102_v53 }
  0x28   :  { %278 = vmatpush.bf16.msra.mxu0 %v617_v60  ;;  %877 = vmatpush.bf16.msra.mxu3 %v617_v60 }
  0x29   :  { %327 = vmatpush.bf16.msra.mxu1 %v621_v61 }
  0x2a   :  { %376 = vmatpush.bf16.msra.mxu2 %v625_v62 }
  0x2c   :  { %279 = vmatpush.bf16.msra.mxu0 %v605_v5  ;;  %878 = vmatpush.bf16.msra.mxu3 %v605_v5 }
  0x2d   :  { %328 = vmatpush.bf16.msra.mxu1 %v609_v6 }
  0x2e   :  { %377 = vmatpush.bf16.msra.mxu2 %v613_v9 }
  0x2f   :  { %280 = vmatmul.bf16.vlgmr.msra.gmra.mxu0 %v698_v10  ;;  %310 = vmatmul.bf16.vlgmr.msra.gmra.mxu3 %v704_v11 }
  0x30   :  { %879 = vmatpush.bf16.msrb.mxu3 %v1075_v7  ;;  %329 = vmatmul.bf16.vlgmr.msra.gmra.mxu1 %v698_v10  ;;  %v700_v7 = vld [vmem:[#allocation2 + $0x10] sm:$0xff] }
  0x31   :  { %378 = vmatmul.bf16.vlgmr.msra.gmra.mxu2 %v698_v10 }
  0x34   :  { %880 = vmatpush.bf16.msrb.mxu3 %v1081_v16 }
  0x38   :  { %881 = vmatpush.bf16.msrb.mxu3 %v1087_v25 }
  0x3c   :  { %882 = vmatpush.bf16.msrb.mxu3 %v1093_v34 }
  0x3f   :  { %285 = vmatmul.bf16.gmra.mxu0 %v699_v12  ;;  %315 = vmatmul.bf16.gmra.mxu3 %v705_v13 }
  0x40   :  { %883 = vmatpush.bf16.msrb.mxu3 %v645_v43  ;;  %334 = vmatmul.bf16.gmra.mxu1 %v699_v12 }
  0x41   :  { %383 = vmatmul.bf16.gmra.mxu2 %v699_v12 }
  0x44   :  { %884 = vmatpush.bf16.msrb.mxu3 %v633_v52 }
  0x48   :  { %885 = vmatpush.bf16.msrb.mxu3 %v621_v61 }
  0x4c   :  { %886 = vmatpush.bf16.msrb.mxu3 %v609_v6 }
  0x4f   :  { %290 = vmatmul.bf16.gmra.mxu0 %v700_v7  ;;  %359 = vmatmul.bf16.vlgmr.msrb.gmra.mxu3 %v704_v11 }
  0x50   :  { %887 = vmatpush.bf16.msra.mxu3 %v1077_v8  ;;  %339 = vmatmul.bf16.gmra.mxu1 %v700_v7  ;;  %v702_v8 = vld [vmem:[#allocation2 + $0x20] sm:$0xff] }
  0x51   :  { %388 = vmatmul.bf16.gmra.mxu2 %v700_v7 }
  0x54   :  { %888 = vmatpush.bf16.msra.mxu3 %v1083_v17 }
  0x58   :  { %889 = vmatpush.bf16.msra.mxu3 %v1089_v26 }
  0x5c   :  { %890 = vmatpush.bf16.msra.mxu3 %v1095_v35 }
  0x5f   :  { %295 = vmatmul.bf16.gmra.mxu0 %v701_v14  ;;  %364 = vmatmul.bf16.gmra.mxu3 %v705_v13 }
  0x60   :  { %891 = vmatpush.bf16.msra.mxu3 %v1099_v44  ;;  %344 = vmatmul.bf16.gmra.mxu1 %v701_v14 }
  0x61   :  { %393 = vmatmul.bf16.gmra.mxu2 %v701_v14 }
  0x64   :  { %892 = vmatpush.bf16.msra.mxu3 %v1102_v53 }
  0x68   :  { %893 = vmatpush.bf16.msra.mxu3 %v625_v62 }
  0x6c   :  { %894 = vmatpush.bf16.msra.mxu3 %v613_v9 }
  0x6f   :  { %300 = vmatmul.bf16.gmra.mxu0 %v702_v8  ;;  %408 = vmatmul.bf16.vlgmr.msra.gmra.mxu3 %v704_v11 }
  0x70   :  { %349 = vmatmul.bf16.gmra.mxu1 %v702_v8 }
  0x71   :  { %398 = vmatmul.bf16.gmra.mxu2 %v702_v8 }
  0x7f   :  { %305 = vmatmul.bf16.gmra.mxu0 %v703_v15  ;;  %413 = vmatmul.bf16.gmra.mxu3 %v705_v13 }
  0x80   :  { %354 = vmatmul.bf16.gmra.mxu1 %v703_v15 }
  0x81   :  { %403 = vmatmul.bf16.gmra.mxu2 %v703_v15 }
  0xac   :  { %v281_v16 = vpop.f32.mrf.mxu0 }
  0xad   :  { %v330_v17 = vpop.f32.mrf.mxu1 }
  0xb2   :  { %v311_v18 = vpop.f32.mrf.mxu3 }
  0xb4   :  { %v379_v19 = vpop.f32.mrf.mxu2  ;;  %v283_v20 = vpop.f32.mrf.mxu0 }
  0xb5   :  { %v733_v21 = vpack.c.bf16 %v283_v20, %v281_v16  ;;  %v332_v22 = vpop.f32.mrf.mxu1 }
  0xb6   :  { %v773_v23 = vpack.c.bf16 %v332_v22, %v330_v17 }
  0xb7   :  { %734 = vst [vmem:[#allocation7] sm:$0xff] %v733_v21  }
  0xb8   :  { %774 = vst [vmem:[#allocation8] sm:$0xff] %v773_v23  }
  0xba   :  { %v313_v24 = vpop.f32.mrf.mxu3 }
  0xbb   :  { %v763_v25 = vpack.c.bf16 %v313_v24, %v311_v18 }
  0xbc   :  { %v381_v26 = vpop.f32.mrf.mxu2  ;;  %v286_v28 = vpop.f32.mrf.mxu0 }
  0xbd   :  { %v813_v27 = vpack.c.bf16 %v381_v26, %v379_v19  ;;  %855 = vst [vmem:[#allocation7 + $0x30] sm:$0xff] %v763_v25   ;;  %v335_v29 = vpop.f32.mrf.mxu1 }
  0xbf   :  { %814 = vst [vmem:[#allocation10] sm:$0xff] %v813_v27  }
  0xc2   :  { %v316_v30 = vpop.f32.mrf.mxu3 }
  0xc4   :  { %v384_v31 = vpop.f32.mrf.mxu2  ;;  %v288_v32 = vpop.f32.mrf.mxu0 }
  0xc5   :  { %v738_v33 = vpack.c.bf16 %v288_v32, %v286_v28  ;;  %v337_v34 = vpop.f32.mrf.mxu1 }
  0xc6   :  { %v778_v35 = vpack.c.bf16 %v337_v34, %v335_v29 }
  0xc7   :  { %850 = vst [vmem:[#allocation7 + $0x8] sm:$0xff] %v738_v33  }
  0xc8   :  { %857 = vst [vmem:[#allocation8 + $0x8] sm:$0xff] %v778_v35  }
  0xca   :  { %v318_v36 = vpop.f32.mrf.mxu3 }
  0xcb   :  { %v768_v37 = vpack.c.bf16 %v318_v36, %v316_v30 }
  0xcc   :  { %v386_v38 = vpop.f32.mrf.mxu2  ;;  %v291_v40 = vpop.f32.mrf.mxu0 }
  0xcd   :  { %v818_v39 = vpack.c.bf16 %v386_v38, %v384_v31  ;;  %856 = vst [vmem:[#allocation7 + $0x38] sm:$0xff] %v768_v37   ;;  %v340_v41 = vpop.f32.mrf.mxu1 }
  0xcf   :  { %864 = vst [vmem:[#allocation10 + $0x8] sm:$0xff] %v818_v39  }
  0xd2   :  { %v360_v42 = vpop.f32.mrf.mxu3 }
  0xd4   :  { %v389_v43 = vpop.f32.mrf.mxu2  ;;  %v293_v44 = vpop.f32.mrf.mxu0 }
  0xd5   :  { %v743_v45 = vpack.c.bf16 %v293_v44, %v291_v40  ;;  %v342_v46 = vpop.f32.mrf.mxu1 }
  0xd6   :  { %v783_v47 = vpack.c.bf16 %v342_v46, %v340_v41 }
  0xd7   :  { %851 = vst [vmem:[#allocation7 + $0x10] sm:$0xff] %v743_v45  }
  0xd8   :  { %858 = vst [vmem:[#allocation8 + $0x10] sm:$0xff] %v783_v47  }
  0xda   :  { %v362_v48 = vpop.f32.mrf.mxu3 }
  0xdb   :  { %v803_v49 = vpack.c.bf16 %v362_v48, %v360_v42 }
  0xdc   :  { %v391_v50 = vpop.f32.mrf.mxu2  ;;  %v296_v52 = vpop.f32.mrf.mxu0 }
  0xdd   :  { %v823_v51 = vpack.c.bf16 %v391_v50, %v389_v43  ;;  %862 = vst [vmem:[#allocation8 + $0x30] sm:$0xff] %v803_v49   ;;  %v345_v53 = vpop.f32.mrf.mxu1 }
  0xdf   :  { %865 = vst [vmem:[#allocation10 + $0x10] sm:$0xff] %v823_v51  }
  0xe2   :  { %v365_v54 = vpop.f32.mrf.mxu3 }
  0xe4   :  { %v394_v55 = vpop.f32.mrf.mxu2  ;;  %v298_v56 = vpop.f32.mrf.mxu0 }
  0xe5   :  { %v748_v57 = vpack.c.bf16 %v298_v56, %v296_v52  ;;  %v347_v58 = vpop.f32.mrf.mxu1 }
  0xe6   :  { %v788_v59 = vpack.c.bf16 %v347_v58, %v345_v53 }
  0xe7   :  { %852 = vst [vmem:[#allocation7 + $0x18] sm:$0xff] %v748_v57  }
  0xe8   :  { %859 = vst [vmem:[#allocation8 + $0x18] sm:$0xff] %v788_v59  }
  0xea   :  { %v367_v60 = vpop.f32.mrf.mxu3 }
  0xeb   :  { %v808_v61 = vpack.c.bf16 %v367_v60, %v365_v54 }
  0xec   :  { %v396_v62 = vpop.f32.mrf.mxu2  ;;  %v301_v0 = vpop.f32.mrf.mxu0 }
  0xed   :  { %v828_v63 = vpack.c.bf16 %v396_v62, %v394_v55  ;;  %863 = vst [vmem:[#allocation8 + $0x38] sm:$0xff] %v808_v61   ;;  %v350_v1 = vpop.f32.mrf.mxu1 }
  0xef   :  { %866 = vst [vmem:[#allocation10 + $0x18] sm:$0xff] %v828_v63  }
  0xf2   :  { %v409_v2 = vpop.f32.mrf.mxu3 }
  0xf4   :  { %v399_v3 = vpop.f32.mrf.mxu2  ;;  %v303_v4 = vpop.f32.mrf.mxu0 }
  0xf5   :  { %v753_v5 = vpack.c.bf16 %v303_v4, %v301_v0  ;;  %v352_v6 = vpop.f32.mrf.mxu1 }
  0xf6   :  { %v793_v9 = vpack.c.bf16 %v352_v6, %v350_v1 }
  0xf7   :  { %853 = vst [vmem:[#allocation7 + $0x20] sm:$0xff] %v753_v5  }
  0xf8   :  { %860 = vst [vmem:[#allocation8 + $0x20] sm:$0xff] %v793_v9  }
  0xfa   :  { %v411_v10 = vpop.f32.mrf.mxu3 }
  0xfb   :  { %v843_v12 = vpack.c.bf16 %v411_v10, %v409_v2 }
  0xfc   :  { %v401_v11 = vpop.f32.mrf.mxu2  ;;  %v306_v7 = vpop.f32.mrf.mxu0 }
  0xfd   :  { %v833_v13 = vpack.c.bf16 %v401_v11, %v399_v3  ;;  %869 = vst [vmem:[#allocation10 + $0x30] sm:$0xff] %v843_v12   ;;  %v355_v14 = vpop.f32.mrf.mxu1 }
  0xff   :  { %867 = vst [vmem:[#allocation10 + $0x20] sm:$0xff] %v833_v13  }
 0x102   :  { %v414_v8 = vpop.f32.mrf.mxu3 }
 0x104   :  { %v404_v15 = vpop.f32.mrf.mxu2  ;;  %v308_v16 = vpop.f32.mrf.mxu0 }
 0x105   :  { %v758_v17 = vpack.c.bf16 %v308_v16, %v306_v7  ;;  %v357_v18 = vpop.f32.mrf.mxu1 }
 0x106   :  { %v798_v19 = vpack.c.bf16 %v357_v18, %v355_v14 }
 0x107   :  { %854 = vst [vmem:[#allocation7 + $0x28] sm:$0xff] %v758_v17  }
 0x108   :  { %861 = vst [vmem:[#allocation8 + $0x28] sm:$0xff] %v798_v19   ;;  %527 = dma.vmem_to_hbm [thread:$0]  %s520_s28, 1024, %s522_s5, [#allocation4], %s1033_s23, %s1033_s23, %s1034_s24  }
 0x109   :  { %540 = dma.vmem_to_hbm [thread:$0]  %s533_s7, 1024, %s535_s10, [#allocation9], %s1033_s23, %s1033_s23, %s1034_s24  }
 0x10a   :  { %v416_v20 = vpop.f32.mrf.mxu3 }
 0x10b   :  { %v848_v22 = vpack.c.bf16 %v416_v20, %v414_v8 }
 0x10c   :  { %v406_v21 = vpop.f32.mrf.mxu2 }
 0x10d   :  { %v838_v23 = vpack.c.bf16 %v406_v21, %v404_v15  ;;  %870 = vst [vmem:[#allocation10 + $0x38] sm:$0xff] %v848_v22  }
 0x10f   :  { %868 = vst [vmem:[#allocation10 + $0x28] sm:$0xff] %v838_v23  }
 0x110   :  { %553 = dma.vmem_to_hbm [thread:$0]  %s546_s12, 1024, %s548_s14, [#allocation9], %s1033_s23, %s1033_s23, %s1034_s24  }
 0x111   :  { %1028 = dma.done.wait [#allocation4], 1024  }
 0x112   :  { %1029 = vsyncadd [#allocation4], 4294966272 }
 0x113   :  { %1030 = dma.done.wait [#allocation9], 2048  }
 0x114   :  { %1031 = vsyncadd [#allocation9], 4294965248 }
 0x115   :  { %566 = vsyncpa [#allocation3], 1 }
 0x116   :  { %567 = vsyncpa [#allocation6], 1 }
 0x117   :  { %568 = vsyncpa [#allocation4], 1 }
 0x118   :  { %569 = vsyncpa [#allocation9], 1 }

</bundles_post_ra>
